<compile_context>
chip_gen: v6e
topology: v6e:2x2x1
jax: 0.10.0
libtpu: 0.0.40
codegen_flags: <defaults>
</compile_context>

<pallas_src>
import functools

import jax
import jax.numpy as jnp
from jax.experimental import pallas as pl
from jax.experimental.pallas import tpu as pltpu

EPS = 1e-6


# ----------------------------- kernels --------------------------------------


def _rmsnorm_kernel(x_ref, scale_ref, o_ref, *, inv_d):
    # x_ref: (TM, D) row tile; scale_ref: (1, D), broadcast over rows.
    x = x_ref[...].astype(jnp.float32)
    # Cross-lane reduce -> XLU, rsqrt -> EUP; only the multiplies hit the VALU.
    ss = jnp.sum(x * x, axis=-1, keepdims=True)            # (TM, 1)
    inv = jax.lax.rsqrt(ss * inv_d + EPS)                   # (TM, 1)
    y = x * inv * scale_ref[...].astype(jnp.float32)        # broadcast (1, D)
    o_ref[...] = y.astype(o_ref.dtype)


def _rms_inv_kernel(x_ref, inv_ref, ss_ref, *, inv_d):
    # Large-D fallback, pass 1: accumulate sum(x^2) across D chunks, emit
    # 1/rms per row on the last chunk.  Grid axis 1 (D chunks) is "arbitrary".
    j = pl.program_id(1)

    @pl.when(j == 0)
    def _():
        ss_ref[...] = jnp.zeros_like(ss_ref)

    x = x_ref[...].astype(jnp.float32)
    ss_ref[...] += jnp.sum(x * x, axis=-1, keepdims=True)

    @pl.when(j == pl.num_programs(1) - 1)
    def _():
        inv_ref[...] = jax.lax.rsqrt(ss_ref[...] * inv_d + EPS)


def _rms_apply_kernel(x_ref, inv_ref, scale_ref, o_ref):
    # Large-D fallback, pass 2: y = x * inv_rms * scale, chunked over D.
    x = x_ref[...].astype(jnp.float32)
    y = x * inv_ref[...] * scale_ref[...].astype(jnp.float32)
    o_ref[...] = y.astype(o_ref.dtype)


# --------------------------- tiling helpers ----------------------------------


def _ceil_to(x, m):
    return -(-x // m) * m


def _sublane_multiple(itemsize):
    # Sub-32-bit dtypes pack along sublanes: keep row tiles sublane-aligned.
    if itemsize >= 4:
        return 8
    if itemsize == 2:
        return 16
    return 32


def _vmem_capacity_bytes():
    # Conservative default is 64 MiB (v7x physical VMEM); v5e/v6e have 128 MiB
    # and will report it via get_tpu_info when available.
    try:
        cap = int(pltpu.get_tpu_info().vmem_capacity_bytes)
        if cap > 0:
            return cap
    except Exception:
        pass
    return 64 * 1024 * 1024


def _num_tensorcores():
    # Best-effort TensorCore-per-chip count (v7x: 2).  On failure return 1,
    # which matches the single-TC v5e/v6e behaviour (no forced split).
    try:
        info = pltpu.get_tpu_info()
        for attr in ("num_cores", "tensorcore_count", "num_tensorcores",
                     "core_count", "num_cores_per_chip"):
            n = getattr(info, attr, None)
            if isinstance(n, int) and 1 <= n <= 8:
                return n
    except Exception:
        pass
    return 1


def _pick_row_tile(R, D, itemsize, budget, num_cores):
    """Largest sublane-aligned row tile whose full pipeline footprint fits the
    VMEM budget.  Returns 0 to request the D-chunked fallback."""
    mult = _sublane_multiple(itemsize)
    # Per-row footprint: double-buffered input + output tiles plus ~2 f32-wide
    # compute temporaries (the upcast x and the pre-store y).  The f32 temps
    # are what would otherwise silently blow v7x's 64 MiB VMEM for bf16 inputs.
    bytes_per_row = 4 * D * itemsize + 8 * D
    max_rows = budget // bytes_per_row
    if max_rows < min(R, mult):
        return 0  # even the minimum legal tile overflows VMEM
    if max_rows >= R:
        if num_cores <= 1:
            return R  # one resident full-extent block; no pointless split
        # Multi-TC chip: split so every core gets a block (grid == num_cores).
        return min(R, _ceil_to(-(-R // num_cores), mult))
    tm = max(mult, (max_rows // mult) * mult)
    steps = -(-R // tm)
    # On multi-TC chips keep small grids a multiple of num_cores so no core
    # idles for an entire step (best effort; irrelevant for large grids).
    if num_cores > 1 and steps % num_cores != 0 and steps < 8 * num_cores:
        target = _ceil_to(steps, num_cores)
        tm2 = min(R, _ceil_to(-(-R // target), mult))
        if tm2 >= mult and (-(-R // tm2)) % num_cores == 0:
            tm = tm2
    return tm


def _x_block_spec(block_shape, index_map, deep_buffering):
    # Optional 3-deep input pipelining (v7x sweep knob, only when VMEM headroom
    # allows); silently falls back to default double buffering otherwise.
    if deep_buffering and hasattr(pl, "Buffered"):
        try:
            return pl.BlockSpec(block_shape, index_map,
                                pipeline_mode=pl.Buffered(3))
        except TypeError:
            pass
    return pl.BlockSpec(block_shape, index_map)


# ------------------------------ wrappers -------------------------------------


def _rmsnorm_large_d(x2d, scale2d, inv_d, itemsize, budget, vmem_limit):
    """Two-pass fallback for very large D (one extra read of x):
    (1) chunked sum-of-squares -> 1/rms per row, (2) chunked scale-multiply."""
    R, D_pad = x2d.shape
    mult = _sublane_multiple(itemsize)

    # D chunk must divide D_pad exactly so no partial chunk folds undefined
    # padding into the reduction.  D_pad is a multiple of 128 by construction.
    td = 128
    for cand in (2048, 1024, 512, 256):
        if D_pad % cand == 0:
            td = cand
            break

    # Rows per tile: as many as fit the pass-2 pipeline budget
    # (double-buffered in/out chunks plus f32 temps).
    row_bytes = (4 * itemsize + 8) * td
    if R <= mult:
        tm = R
    else:
        tm = min(R, max(mult, budget // row_bytes), 1024)
        tm = max(mult, (tm // mult) * mult)

    grid = (pl.cdiv(R, tm), pl.cdiv(D_pad, td))

    inv = pl.pallas_call(
        functools.partial(_rms_inv_kernel, inv_d=inv_d),
        out_shape=jax.ShapeDtypeStruct((R, 1), jnp.float32),
        grid_spec=pltpu.PrefetchScalarGridSpec(
            num_scalar_prefetch=0,
            grid=grid,
            in_specs=[pl.BlockSpec((tm, td), lambda i, j: (i, j))],
            out_specs=pl.BlockSpec((tm, 1), lambda i, j: (i, 0)),
            scratch_shapes=[pltpu.VMEM((tm, 1), jnp.float32)],
        ),
        compiler_params=pltpu.CompilerParams(
            dimension_semantics=("parallel", "arbitrary"),
            vmem_limit_bytes=vmem_limit,
        ),
    )(x2d)

    out = pl.pallas_call(
        _rms_apply_kernel,
        out_shape=jax.ShapeDtypeStruct((R, D_pad), x2d.dtype),
        grid_spec=pltpu.PrefetchScalarGridSpec(
            num_scalar_prefetch=0,
            grid=grid,
            in_specs=[pl.BlockSpec((tm, td), lambda i, j: (i, j)),
                      pl.BlockSpec((tm, 1), lambda i, j: (i, 0)),
                      pl.BlockSpec((1, td), lambda i, j: (0, j))],
            out_specs=pl.BlockSpec((tm, td), lambda i, j: (i, j)),
        ),
        compiler_params=pltpu.CompilerParams(
            dimension_semantics=("parallel", "parallel"),
            vmem_limit_bytes=vmem_limit,
        ),
    )(x2d, inv, scale2d)
    return out


def rmsnorm(x, scale):
    """x: (B, S, D), scale: (D,). Returns (B, S, D)."""
    B, S, D = x.shape
    R = B * S
    dtype = x.dtype
    itemsize = jnp.dtype(dtype).itemsize

    # Lane-dense layout: pad D to a multiple of 128 with zeros so stores are
    # full unmasked `vst`s.  Zeros keep sum(x^2) exact (inv_d still uses the
    # true D); padded columns are sliced off below.  No-op when D % 128 == 0.
    D_pad = _ceil_to(D, 128)
    x2d = x.reshape(R, D)
    scale2d = scale.reshape(1, D)
    if D_pad != D:
        x2d = jnp.pad(x2d, ((0, 0), (0, D_pad - D)))
        scale2d = jnp.pad(scale2d, ((0, 0), (0, D_pad - D)))

    # ---- VMEM budgeting (v7x-safe) ----
    vmem_cap = _vmem_capacity_bytes()
    num_cores = _num_tensorcores()
    # Scoped-VMEM limit clamped to <= 48 MiB: safely under v7x's 64 MiB
    # physical VMEM, and comfortable on 128 MiB v5e/v6e.
    vmem_limit = int(min(48 << 20, vmem_cap * 0.7))
    # Pipeline budget for the tile picker; headroom under the limit is left
    # for the resident scale block and compiler scratch.
    budget = int(vmem_limit * 0.85)

    inv_d = 1.0 / D  # mean over the *unpadded* latent size

    tm = _pick_row_tile(R, D_pad, itemsize, budget, num_cores)

    if tm == 0:
        # Latent dim too large for even a minimum row tile.
        out2d = _rmsnorm_large_d(x2d, scale2d, inv_d, itemsize, budget,
                                 vmem_limit)
    else:
        grid = (pl.cdiv(R, tm),)
        # 3-deep input buffering only on multi-TC (v7x-class) chips and only
        # when the extra buffer still fits the budget; default 2 elsewhere.
        deep = (num_cores > 1 and
                (5 * tm * D_pad * itemsize + 8 * tm * D_pad) <= budget)
        out2d = pl.pallas_call(
            functools.partial(_rmsnorm_kernel, inv_d=inv_d),
            out_shape=jax.ShapeDtypeStruct((R, D_pad), dtype),
            grid_spec=pltpu.PrefetchScalarGridSpec(
                num_scalar_prefetch=0,
                grid=grid,
                in_specs=[
                    _x_block_spec((tm, D_pad), lambda i: (i, 0), deep),
                    pl.BlockSpec((1, D_pad), lambda i: (0, 0)),  # resident scale
                ],
                out_specs=pl.BlockSpec((tm, D_pad), lambda i: (i, 0)),
            ),
            compiler_params=pltpu.CompilerParams(
                dimension_semantics=("parallel",),
                vmem_limit_bytes=vmem_limit,
            ),
        )(x2d, scale2d)

    if out2d.shape[1] != D:
        out2d = out2d[:, :D]
    return out2d.reshape(B, S, D)


def rmsnorm_ref(x, scale):
    norm = x * jax.lax.rsqrt(jnp.mean(x * x, axis=-1, keepdims=True) + EPS)
    return norm * scale[None, None, :]


if __name__ == "__main__":
    # Small shapes consistent with the module (latent_size=128 default).
    B, S, D = 2, 8, 128
    key = jax.random.PRNGKey(0)
    x = jax.random.normal(key, (B, S, D), dtype=jnp.float32)
    # Matches torch.nn.Parameter(torch.ones(latent_size)).
    scale = jnp.ones((D,), dtype=jnp.float32)

    out = rmsnorm(x, scale)
    out = jax.block_until_ready(out)

    ref = rmsnorm_ref(x, scale)
    assert out.shape == (B, S, D)
    assert jnp.allclose(out, ref, atol=1e-5, rtol=1e-5)

    print("KERNEL_OK")
</pallas_src>

<mosaic_0001>
module attributes {stable_mosaic.version = 11 : i64} {
  func.func @_rmsnorm_kernel(%arg0: i32, %arg1: memref<16x128xf32, #tpu.memory_space<vmem>>, %arg2: memref<1x128xf32, #tpu.memory_space<vmem>>, %arg3: memref<16x128xf32, #tpu.memory_space<vmem>>) attributes {dimension_semantics = [#tpu.dimension_semantics<parallel>], iteration_bounds = array<i64: 1>, scalar_prefetch = 0 : i64, scratch_operands = 0 : i64, tpu.core_type = #tpu.core_type<tc>, window_params = [{transform_indices = @transform_0, window_bounds = array<i64: 16, 128>}, {pipeline_mode = #tpu.pipeline_mode<synchronous>, transform_indices = @transform_1, window_bounds = array<i64: 1, 128>}, {transform_indices = @transform_2, window_bounds = array<i64: 16, 128>}]} {
    %c0 = arith.constant 0 : index
    %c0_0 = arith.constant 0 : index
    %0 = vector.load %arg1[%c0, %c0_0] : memref<16x128xf32, #tpu.memory_space<vmem>>, vector<16x128xf32>
    %1 = arith.mulf %0, %0 : vector<16x128xf32>
    %cst = arith.constant dense<0.000000e+00> : vector<16xf32>
    %2 = vector.multi_reduction <add>, %1, %cst [1] : vector<16x128xf32> to vector<16xf32>
    %3 = vector.shape_cast %2 : vector<16xf32> to vector<16x1xf32>
    %cst_1 = arith.constant 7.812500e-03 : f32
    %4 = vector.broadcast %cst_1 : f32 to vector<16x1xf32>
    %5 = arith.mulf %3, %4 : vector<16x1xf32>
    %cst_2 = arith.constant 9.99999997E-7 : f32
    %6 = vector.broadcast %cst_2 : f32 to vector<16x1xf32>
    %7 = arith.addf %5, %6 : vector<16x1xf32>
    %8 = math.rsqrt %7 : vector<16x1xf32>
    %9 = vector.broadcast %8 : vector<16x1xf32> to vector<16x128xf32>
    %10 = arith.mulf %0, %9 : vector<16x128xf32>
    %c0_3 = arith.constant 0 : index
    %c0_4 = arith.constant 0 : index
    %11 = vector.load %arg2[%c0_3, %c0_4] : memref<1x128xf32, #tpu.memory_space<vmem>>, vector<1x128xf32>
    %12 = vector.broadcast %11 : vector<1x128xf32> to vector<16x128xf32>
    %13 = arith.mulf %10, %12 : vector<16x128xf32>
    %c0_5 = arith.constant 0 : index
    %c0_6 = arith.constant 0 : index
    %14 = vector.load %arg3[%c0_5, %c0_6] : memref<16x128xf32, #tpu.memory_space<vmem>>, vector<16x128xf32>
    tpu.vector_store %arg3[%c0_5, %c0_6], %13 {strides = array<i32>} : memref<16x128xf32, #tpu.memory_space<vmem>>, vector<16x128xf32>,
    return
  }
  func.func @transform_0(%arg0: i32) -> (i32, i32) {
    %c0_i32 = arith.constant 0 : i32
    %c0_i32_0 = arith.constant 0 : i32
    return %arg0, %c0_i32 : i32, i32
  }
  func.func @transform_1(%arg0: i32) -> (i32, i32) {
    %c0_i32 = arith.constant 0 : i32
    %c0_i32_0 = arith.constant 0 : i32
    %c0_i32_1 = arith.constant 0 : i32
    return %c0_i32, %c0_i32_0 : i32, i32
  }
  func.func @transform_2(%arg0: i32) -> (i32, i32) {
    %c0_i32 = arith.constant 0 : i32
    %c0_i32_0 = arith.constant 0 : i32
    return %arg0, %c0_i32 : i32, i32
  }
}

</mosaic_0001>

<bundles_post_ra>
// kernel: tpu_custom_call.1
= control target key start
LH: loop header
LB: loop body
LE: loop exit
PB: predicated region body
PF: predicated region fallthrough
CT: control target
= control target key end

     0   :  { %7 = vsyncpa [#allocation3], 0  ;;  %s157_s0 = inlined_call_operand.hbm [shape: f32[16,128], index: 0, kind: input, shape index: {}]   ;;  %s158_s1 = inlined_call_operand.vmem [shape: f32[1,128], index: 1, kind: input, shape index: {}]   ;;  %s159_s2 = inlined_call_operand.hbm [shape: f32[16,128], index: 2, kind: output, shape index: {}]  }
   0x1   :  { %8 = vsyncpa [#allocation4], 0  ;;  %s123_s9 = smov [#allocation2]  }
   0x2   :  { %s14_s10 = sshll.u32 %s123_s9, 4  ;;  %s15_s10 = int_to_ptr.vmem [resolvable:$true] %s14_s10 }
   0x3   :  { %s87_s11 = scalar_lea.vmem %s15_s10, 256  ;;  %p92_p1 = scmp.lt.s32.totalorder %s15_s10, %s15_s10 }
   0x4   :  { %p88_p0 = scmp.ne.s32.totalorder %s15_s10, %s87_s11  ;;  %p93_p2 = scmp.lt.s32.totalorder %s87_s11, %s87_s11 }
   0x6   :  { %p94_p3 = por %p93_p2, %p92_p1 }
   0x8   :  { %p95_p4 = pnand %p94_p3, %p88_p0 }
   0xa   :  { %98 = shalt.err (!%p95_p4)
}
   0xb   :  { %s124_s12 = smov 128   ;;  %s125_s13 = smov 8  }
   0xc   :  { %20 = dma.hbm_to_vmem [thread:$0]  %s157_s0, 256, %s15_s10, [#allocation3], %s124_s12, %s124_s12, %s125_s13  }
   0xd   :  { %119 = dma.done.wait [#allocation3], 256  }
   0xe   :  { %120 = vsyncadd [#allocation3], 4294967040  ;;  %v26_v0 = vld [vmem:[#allocation2] sm:$0xff]  ;;  %v27_v1 = vld [vmem:[#allocation2 + $0x8] sm:$0xff]  ;;  %s126_s0 = smov [#allocation5]  }
   0xf   :  { %v28_v2 = vmul.f32 %v26_v0, %v26_v0  ;;  %v29_v3 = vmul.f32 %v27_v1, %v27_v1  ;;  %v70_v11 = vld [vmem:[%s158_s1] ss:$0 sm:$0xff]  ;;  %s58_s18 = sshll.u32 %s126_s0, 4  ;;  %s59_s18 = int_to_ptr.vmem [resolvable:$true] %s58_s18 }
  0x10   :  { %s99_s19 = scalar_lea.vmem %s59_s18, 256  ;;  %p104_p6 = scmp.lt.s32.totalorder %s59_s18, %s59_s18 }
  0x11   :  { %30 = vadd.xlane.f32.xlu0 %v28_v2  ;;  %p100_p5 = scmp.ne.s32.totalorder %s59_s18, %s99_s19  ;;  %p105_p7 = scmp.lt.s32.totalorder %s99_s19, %s99_s19 }
  0x13   :  { %p106_p8 = por %p105_p7, %p104_p6 }
  0x15   :  { %32 = vadd.xlane.f32.xlu0 %v29_v3  ;;  %p107_p9 = pnand %p106_p8, %p100_p5 }
  0x9a   :  { %v31_v4 = vpop.xlane.xlu0 %30 }
  0x9b   :  { %v34_v5 = vmul.f32 0.0078125, %v31_v4 }
  0x9d   :  { %v36_v6 = vadd.f32 1e-06, %v34_v5 }
  0x9e   :  { %v33_v7 = vpop.xlane.xlu0 %32 }
  0x9f   :  { %75 = vrsqrt.f32 %v36_v6  ;;  %v35_v8 = vmul.f32 0.0078125, %v33_v7 }
  0xa1   :  { %v37_v9 = vadd.f32 1e-06, %v35_v8 }
  0xa3   :  { %77 = vrsqrt.f32 %v37_v9 }
  0xac   :  { %v76_v10 = vpop.eup %75 }
  0xad   :  { %v40_v12 = vmul.f32 %v76_v10, %v26_v0 }
  0xaf   :  { %v49_v13 = vmul.f32 %v70_v11, %v40_v12 }
  0xb0   :  { %v78_v14 = vpop.eup %77 }
  0xb1   :  { %v41_v15 = vmul.f32 %v78_v14, %v27_v1  ;;  %51 = vst [vmem:[#allocation5] sm:$0xff] %v49_v13 }
  0xb3   :  { %v50_v16 = vmul.f32 %v70_v11, %v41_v15 }
  0xb5   :  { %52 = vst [vmem:[#allocation5 + $0x8] sm:$0xff] %v50_v16 }
  0xb6   :  { %110 = shalt.err (!%p107_p9)
}
  0xb7   :  { %64 = dma.vmem_to_hbm [thread:$0]  %s59_s18, 256, %s159_s2, [#allocation4], %s124_s12, %s124_s12, %s125_s13  }
  0xb8   :  { %121 = dma.done.wait [#allocation4], 256  }
  0xb9   :  { %122 = vsyncadd [#allocation4], 4294967040 }
  0xba   :  { %68 = vsyncpa [#allocation3], 1 }
  0xbb   :  { %69 = vsyncpa [#allocation4], 1 }

</bundles_post_ra>
